<compile_context>
chip_gen: v5e
topology: v5e:2x2
jax: 0.10.0
libtpu: 0.0.40
codegen_flags: <defaults>
</compile_context>

<pallas_src>
import functools

import jax
import jax.numpy as jnp
from jax.experimental import pallas as pl
from jax.experimental.pallas import tpu as pltpu

ALPHA = 0.25
GAMMA = 2.0

_MAX_TILE_BYTES = 4 * 1024 * 1024        # per-input f32 tile cap (v7x-safe)
_VMEM_LIMIT_BYTES = 48 * 1024 * 1024     # explicit scoped-VMEM limit


def _focal_loss_kernel(logits_ref, targets_ref, out_ref, acc_ref, *, alpha, gamma):
    s = pl.program_id(1)

    @pl.when(s == 0)
    def _():
        acc_ref[...] = jnp.zeros_like(acc_ref)

    x = logits_ref[...].astype(jnp.float32)
    t = targets_ref[...].astype(jnp.float32)

    # Share the expensive transcendental exp(-|x|) between the numerically
    # stable sigmoid and the BCE-with-logits log term (one exp + one log1p
    # per element instead of ~4 EUP ops).
    e = jnp.exp(-jnp.abs(x))                       # EUP
    log_term = jnp.log1p(e)                        # EUP
    inv_1pe = 1.0 / (1.0 + e)                      # sigmoid(|x|)
    probs = jnp.where(x >= 0.0, inv_1pe, e * inv_1pe)   # == sigmoid(x)

    # Stable BCE with logits: max(x, 0) - x*t + log(1 + exp(-|x|))
    bce = jnp.maximum(x, 0.0) - x * t + log_term

    p_t = probs * t + (1.0 - probs) * (1.0 - t)
    alpha_factor = t * alpha + (1.0 - t) * (1.0 - alpha)
    one_minus_pt = jnp.maximum(1.0 - p_t, 0.0)     # clamp fp-rounding negatives

    if gamma == 2.0:
        modulating = one_minus_pt * one_minus_pt   # avoid generic pow (exp+log)
    elif float(gamma) == int(gamma) and gamma >= 0:
        m = jnp.ones_like(one_minus_pt)
        for _ in range(int(gamma)):
            m = m * one_minus_pt
        modulating = m
    else:
        modulating = one_minus_pt ** gamma         # generic (non-integer) gamma

    # Pure VPU elementwise accumulation; defer the cross-lane reduce.
    acc_ref[...] += alpha_factor * modulating * bce

    @pl.when(s == pl.num_programs(1) - 1)
    def _():
        # Single full reduction (XLU) once per split; raw partial sum out.
        out_ref[...] = jnp.sum(acc_ref[...], keepdims=True)[None]


def _pick_tile_rows(B, C, max_tile_bytes):
    """Largest row-block that (a) divides B, (b) is a multiple of 8 (or == B),
    and (c) keeps the f32 tile under max_tile_bytes."""
    row_bytes = C * 4
    if B * row_bytes <= max_tile_bytes:
        return B
    for t in range(B, 0, -1):
        if B % t == 0 and t % 8 == 0 and t * row_bytes <= max_tile_bytes:
            return t
    # No budget-respecting tiling; fall back to smallest legal tile.
    for t in range(8, B + 1, 8):
        if B % t == 0:
            return t
    return B  # single full-array block (full-dim blocks are always legal)


def bce_focal_loss(logits, targets, *, alpha=ALPHA, gamma=GAMMA,
                   max_tile_bytes=_MAX_TILE_BYTES, num_parallel=2):
    assert logits.shape == targets.shape
    assert logits.ndim == 2
    B, C = logits.shape

    tile_rows = _pick_tile_rows(B, C, max_tile_bytes)
    assert B % tile_rows == 0
    row_blocks = B // tile_rows

    # Megacore split: independent partial sums along a leading 'parallel' axis.
    if num_parallel > 1 and row_blocks % num_parallel == 0 and row_blocks >= num_parallel:
        P = num_parallel
    else:
        P = 1
    steps = row_blocks // P

    kernel = functools.partial(_focal_loss_kernel, alpha=alpha, gamma=gamma)

    in_map = lambda p, s: (p * steps + s, 0)

    partials = pl.pallas_call(
        kernel,
        out_shape=jax.ShapeDtypeStruct((P, 1, 1), jnp.float32),
        grid_spec=pltpu.PrefetchScalarGridSpec(
            num_scalar_prefetch=0,
            grid=(P, steps),
            in_specs=[
                pl.BlockSpec((tile_rows, C), in_map),
                pl.BlockSpec((tile_rows, C), in_map),
            ],
            out_specs=pl.BlockSpec((1, 1, 1), lambda p, s: (p, 0, 0)),
            scratch_shapes=[pltpu.VMEM((tile_rows, C), jnp.float32)],
        ),
        compiler_params=pltpu.CompilerParams(
            dimension_semantics=("parallel", "arbitrary"),
            vmem_limit_bytes=_VMEM_LIMIT_BYTES,
        ),
    )(logits, targets)

    inv_total = 1.0 / (B * C)   # precomputed; final step is just a multiply
    return jnp.sum(partials) * inv_total


def _reference(logits, targets, alpha=ALPHA, gamma=GAMMA):
    probs = jax.nn.sigmoid(logits)
    bce = (jnp.maximum(logits, 0.0) - logits * targets
           + jnp.log1p(jnp.exp(-jnp.abs(logits))))
    p_t = probs * targets + (1 - probs) * (1 - targets)
    alpha_factor = targets * alpha + (1 - targets) * (1 - alpha)
    modulating = (1.0 - p_t) ** gamma
    return jnp.mean(alpha_factor * modulating * bce)


if __name__ == "__main__":
    key = jax.random.PRNGKey(0)
    k1, k2, k3, k4 = jax.random.split(key, 4)

    # Main check: (batch, num_classes) multi-label logits; fits one tile.
    B, C = 32, 256
    logits = jax.random.normal(k1, (B, C), dtype=jnp.float32) * 3.0
    targets = (jax.random.uniform(k2, (B, C)) > 0.5).astype(jnp.float32)

    loss = jax.block_until_ready(bce_focal_loss(logits, targets))
    ref = _reference(logits, targets)
    assert jnp.allclose(loss, ref, rtol=1e-5, atol=1e-6), (loss, ref)

    # Second check: force a tiny tile budget so the multi-step reduction and
    # the 2-way parallel split (megacore path) are both exercised.
    B2, C2 = 64, 256
    logits2 = jax.random.normal(k3, (B2, C2), dtype=jnp.float32) * 3.0
    targets2 = (jax.random.uniform(k4, (B2, C2)) > 0.5).astype(jnp.float32)

    loss2 = jax.block_until_ready(
        bce_focal_loss(logits2, targets2, max_tile_bytes=8 * 1024))
    ref2 = _reference(logits2, targets2)
    assert jnp.allclose(loss2, ref2, rtol=1e-5, atol=1e-6), (loss2, ref2)

    print("KERNEL_OK")
</pallas_src>

<mosaic_0001>
module attributes {stable_mosaic.version = 11 : i64} {
  func.func @_focal_loss_kernel(%arg0: i32, %arg1: i32, %arg2: memref<32x256xf32, #tpu.memory_space<vmem>>, %arg3: memref<32x256xf32, #tpu.memory_space<vmem>>, %arg4: memref<1x1x1xf32, #tpu.memory_space<vmem>>, %arg5: memref<32x256xf32, #tpu.memory_space<vmem>>) attributes {dimension_semantics = [#tpu.dimension_semantics<parallel>, #tpu.dimension_semantics<arbitrary>], iteration_bounds = array<i64: 1, 1>, scalar_prefetch = 0 : i64, scratch_operands = 1 : i64, tpu.core_type = #tpu.core_type<tc>, window_params = [{transform_indices = @transform_0, window_bounds = array<i64: 32, 256>}, {transform_indices = @transform_1, window_bounds = array<i64: 32, 256>}, {transform_indices = @transform_2, window_bounds = array<i64: 1, 1, 1>}]} {
    %c0_i32 = arith.constant 0 : i32
    %0 = arith.cmpi eq, %arg1, %c0_i32 : i32
    %1 = arith.extui %0 : i1 to i32
    %c0_i32_0 = arith.constant 0 : i32
    %2 = arith.cmpi ne, %1, %c0_i32_0 : i32
    scf.if %2 {
      %cst_21 = arith.constant 0.000000e+00 : f32
      %50 = vector.broadcast %cst_21 : f32 to vector<32x256xf32>
      %c0_22 = arith.constant 0 : index
      %c0_23 = arith.constant 0 : index
      %51 = vector.load %arg5[%c0_22, %c0_23] : memref<32x256xf32, #tpu.memory_space<vmem>>, vector<32x256xf32>
      tpu.vector_store %arg5[%c0_22, %c0_23], %50 {strides = array<i32>} : memref<32x256xf32, #tpu.memory_space<vmem>>, vector<32x256xf32>,
    } else {
    }
    %c0 = arith.constant 0 : index
    %c0_1 = arith.constant 0 : index
    %3 = vector.load %arg2[%c0, %c0_1] : memref<32x256xf32, #tpu.memory_space<vmem>>, vector<32x256xf32>
    %c0_2 = arith.constant 0 : index
    %c0_3 = arith.constant 0 : index
    %4 = vector.load %arg3[%c0_2, %c0_3] : memref<32x256xf32, #tpu.memory_space<vmem>>, vector<32x256xf32>
    %5 = math.absf %3 : vector<32x256xf32>
    %cst = arith.constant 0.000000e+00 : f32
    %6 = vector.broadcast %cst : f32 to vector<32x256xf32>
    %7 = arith.subf %6, %5 : vector<32x256xf32>
    %8 = math.exp %7 : vector<32x256xf32>
    %9 = math.log1p %8 : vector<32x256xf32>
    %cst_4 = arith.constant 1.000000e+00 : f32
    %10 = vector.broadcast %cst_4 : f32 to vector<32x256xf32>
    %11 = arith.addf %10, %8 : vector<32x256xf32>
    %cst_5 = arith.constant 1.000000e+00 : f32
    %12 = vector.broadcast %cst_5 : f32 to vector<32x256xf32>
    %13 = arith.divf %12, %11 : vector<32x256xf32>
    %cst_6 = arith.constant 0.000000e+00 : f32
    %14 = vector.broadcast %cst_6 : f32 to vector<32x256xf32>
    %15 = arith.cmpf oge, %3, %14 : vector<32x256xf32>
    %16 = arith.mulf %8, %13 : vector<32x256xf32>
    %17 = arith.select %15, %13, %16 : vector<32x256xi1>, vector<32x256xf32>
    %cst_7 = arith.constant 0.000000e+00 : f32
    %18 = vector.broadcast %cst_7 : f32 to vector<32x256xf32>
    %19 = arith.maximumf %3, %18 : vector<32x256xf32>
    %20 = arith.mulf %3, %4 : vector<32x256xf32>
    %21 = arith.subf %19, %20 : vector<32x256xf32>
    %22 = arith.addf %21, %9 : vector<32x256xf32>
    %23 = arith.mulf %17, %4 : vector<32x256xf32>
    %cst_8 = arith.constant 1.000000e+00 : f32
    %24 = vector.broadcast %cst_8 : f32 to vector<32x256xf32>
    %25 = arith.subf %24, %17 : vector<32x256xf32>
    %cst_9 = arith.constant 1.000000e+00 : f32
    %26 = vector.broadcast %cst_9 : f32 to vector<32x256xf32>
    %27 = arith.subf %26, %4 : vector<32x256xf32>
    %28 = arith.mulf %25, %27 : vector<32x256xf32>
    %29 = arith.addf %23, %28 : vector<32x256xf32>
    %cst_10 = arith.constant 2.500000e-01 : f32
    %30 = vector.broadcast %cst_10 : f32 to vector<32x256xf32>
    %31 = arith.mulf %4, %30 : vector<32x256xf32>
    %cst_11 = arith.constant 1.000000e+00 : f32
    %32 = vector.broadcast %cst_11 : f32 to vector<32x256xf32>
    %33 = arith.subf %32, %4 : vector<32x256xf32>
    %cst_12 = arith.constant 7.500000e-01 : f32
    %34 = vector.broadcast %cst_12 : f32 to vector<32x256xf32>
    %35 = arith.mulf %33, %34 : vector<32x256xf32>
    %36 = arith.addf %31, %35 : vector<32x256xf32>
    %cst_13 = arith.constant 1.000000e+00 : f32
    %37 = vector.broadcast %cst_13 : f32 to vector<32x256xf32>
    %38 = arith.subf %37, %29 : vector<32x256xf32>
    %cst_14 = arith.constant 0.000000e+00 : f32
    %39 = vector.broadcast %cst_14 : f32 to vector<32x256xf32>
    %40 = arith.maximumf %38, %39 : vector<32x256xf32>
    %41 = arith.mulf %40, %40 : vector<32x256xf32>
    %c0_15 = arith.constant 0 : index
    %c0_16 = arith.constant 0 : index
    %42 = vector.load %arg5[%c0_15, %c0_16] : memref<32x256xf32, #tpu.memory_space<vmem>>, vector<32x256xf32>
    %43 = arith.mulf %36, %41 : vector<32x256xf32>
    %44 = arith.mulf %43, %22 : vector<32x256xf32>
    %45 = arith.addf %42, %44 : vector<32x256xf32>
    %c0_17 = arith.constant 0 : index
    %c0_18 = arith.constant 0 : index
    %46 = vector.load %arg5[%c0_17, %c0_18] : memref<32x256xf32, #tpu.memory_space<vmem>>, vector<32x256xf32>
    tpu.vector_store %arg5[%c0_17, %c0_18], %45 {strides = array<i32>} : memref<32x256xf32, #tpu.memory_space<vmem>>, vector<32x256xf32>,
    %c0_i32_19 = arith.constant 0 : i32
    %47 = arith.cmpi eq, %arg1, %c0_i32_19 : i32
    %48 = arith.extui %47 : i1 to i32
    %c0_i32_20 = arith.constant 0 : i32
    %49 = arith.cmpi ne, %48, %c0_i32_20 : i32
    scf.if %49 {
      %c0_21 = arith.constant 0 : index
      %c0_22 = arith.constant 0 : index
      %50 = vector.load %arg5[%c0_21, %c0_22] : memref<32x256xf32, #tpu.memory_space<vmem>>, vector<32x256xf32>
      %51 = vector.shape_cast %50 : vector<32x256xf32> to vector<1x32x256xf32>
      %cst_23 = arith.constant dense<0.000000e+00> : vector<1xf32>
      %52 = vector.multi_reduction <add>, %51, %cst_23 [1, 2] : vector<1x32x256xf32> to vector<1xf32>
      %53 = vector.shape_cast %52 : vector<1xf32> to vector<1x1x1xf32>
      %54 = vector.extract %53[0, 0, 0] : f32 from vector<1x1x1xf32>
      %55 = vector.broadcast %54 : f32 to vector<1x1xf32>
      %56 = vector.shape_cast %55 : vector<1x1xf32> to vector<1x1x1xf32>
      %c0_24 = arith.constant 0 : index
      %c0_25 = arith.constant 0 : index
      %c0_26 = arith.constant 0 : index
      %57 = vector.load %arg4[%c0_24, %c0_25, %c0_26] : memref<1x1x1xf32, #tpu.memory_space<vmem>>, vector<1x1x1xf32>
      tpu.vector_store %arg4[%c0_24, %c0_25, %c0_26], %56 {strides = array<i32>} : memref<1x1x1xf32, #tpu.memory_space<vmem>>, vector<1x1x1xf32>,
    } else {
    }
    return
  }
  func.func @transform_0(%arg0: i32, %arg1: i32) -> (i32, i32) {
    %c1_i32 = arith.constant 1 : i32
    %0 = arith.muli %arg0, %c1_i32 : i32
    %1 = arith.addi %0, %arg1 : i32
    %c0_i32 = arith.constant 0 : i32
    %c0_i32_0 = arith.constant 0 : i32
    return %1, %c0_i32 : i32, i32
  }
  func.func @transform_1(%arg0: i32, %arg1: i32) -> (i32, i32) {
    %c1_i32 = arith.constant 1 : i32
    %0 = arith.muli %arg0, %c1_i32 : i32
    %1 = arith.addi %0, %arg1 : i32
    %c0_i32 = arith.constant 0 : i32
    %c0_i32_0 = arith.constant 0 : i32
    return %1, %c0_i32 : i32, i32
  }
  func.func @transform_2(%arg0: i32, %arg1: i32) -> (i32, i32, i32) {
    %c0_i32 = arith.constant 0 : i32
    %c0_i32_0 = arith.constant 0 : i32
    %c0_i32_1 = arith.constant 0 : i32
    return %arg0, %c0_i32, %c0_i32_0 : i32, i32, i32
  }
}

</mosaic_0001>

<bundles_post_ra>
// kernel: tpu_custom_call.1
= control target key start
LH: loop header
LB: loop body
LE: loop exit
PB: predicated region body
PF: predicated region fallthrough
CT: control target
= control target key end

     0   :  { %7 = vsyncpa [#allocation4], 0  ;;  %s1270_s0 = inlined_call_operand.hbm [shape: f32[32,256], index: 0, kind: input, shape index: {}]   ;;  %s1271_s1 = inlined_call_operand.hbm [shape: f32[32,256], index: 1, kind: input, shape index: {}]   ;;  %s1272_s2 = inlined_call_operand.hbm [shape: f32[1,1,1], index: 2, kind: output, shape index: {}]  }
   0x1   :  { %8 = vsyncpa [#allocation7], 0 }
   0x2   :  { %9 = vsyncpa [#allocation5], 0  ;;  %s19_s11 = sshll.u32 %s1270_s0, 4  ;;  %s683_s12 = smov [#allocation3]   ;;  %s20_s11 = int_to_ptr.hbm [resolvable:$true] %s19_s11 }
   0x3   :  { %s21_s13 = sshll.u32 %s683_s12, 4  ;;  %s37_s16 = sshll.u32 %s1271_s1, 4  ;;  %s22_s13 = int_to_ptr.vmem [resolvable:$true] %s21_s13  ;;  %s38_s16 = int_to_ptr.hbm [resolvable:$true] %s37_s16 }
   0x4   :  { %s684_s17 = smov 256   ;;  %s685_s18 = smov 16  }
   0x5   :  { %27 = dma.hbm_to_vmem [thread:$0]  %s20_s11, 1024, %s22_s13, [#allocation4], %s684_s17, %s684_s17, %s685_s18  }
   0x6   :  { %s686_s19 = smov [#allocation6]  }
   0x7   :  { %s39_s20 = sshll.u32 %s686_s19, 4  ;;  %s40_s20 = int_to_ptr.vmem [resolvable:$true] %s39_s20 }
   0x8   :  { %45 = dma.hbm_to_vmem [thread:$0]  %s38_s16, 1024, %s40_s20, [#allocation7], %s684_s17, %s684_s17, %s685_s18  }
   0x9   :  { %677 = dma.done.wait [#allocation4], 1024  }
   0xa   :  { %678 = vsyncadd [#allocation4], 4294966272 }
   0xb   :  { %679 = dma.done.wait [#allocation7], 1024  }
   0xc   :  { %680 = vsyncadd [#allocation7], 4294966272  ;;  %v709_v0 = vld [vmem:[#allocation3] sm:$0xff]  ;;  %v711_v1 = vld [vmem:[#allocation3 + $0x8] sm:$0xff]  ;;  %s687_s0 = smov [#allocation8]   ;;  %s539_s23 = sshll.u32 %s1272_s2, 4  ;;  %s540_s23 = int_to_ptr.hbm [resolvable:$true] %s539_s23 }
   0xd   :  { %v713_v2 = vld [vmem:[#allocation3 + $0x10] sm:$0xff]  ;;  %v715_v3 = vld [vmem:[#allocation3 + $0x18] sm:$0xff]  ;;  %v86_v4 = vand.u32 2147483647, %v709_v0  ;;  %v718_v5 = vld [vmem:[#allocation3 + $0x20] sm:$0xff]  ;;  %s537_s1 = sshll.u32 %s687_s0, 4  ;;  %s538_s1 = int_to_ptr.vmem [resolvable:$true] %s537_s1 }
   0xe   :  { %v720_v6 = vld [vmem:[#allocation3 + $0x28] sm:$0xff]  ;;  %v87_v7 = vand.u32 2147483647, %v711_v1  ;;  %v723_v8 = vld [vmem:[#allocation3 + $0x30] sm:$0xff]  ;;  %v88_v9 = vand.u32 2147483647, %v713_v2 }
   0xf   :  { %v94_v10 = vsub.f32 0.0, %v86_v4  ;;  %v89_v11 = vand.u32 2147483647, %v715_v3  ;;  %v90_v13 = vand.u32 2147483647, %v718_v5  ;;  %v729_v16 = vld [vmem:[#allocation3 + $0x38] sm:$0xff] }
  0x10   :  { %v95_v12 = vsub.f32 0.0, %v87_v7  ;;  %v91_v14 = vand.u32 2147483647, %v720_v6  ;;  %v96_v15 = vsub.f32 0.0, %v88_v9  ;;  %v92_v17 = vand.u32 2147483647, %v723_v8 }
  0x11   :  { %v97_v18 = vsub.f32 0.0, %v89_v11  ;;  %v98_v19 = vsub.f32 0.0, %v90_v13  ;;  %v102_v21 = vmul.f32 1.442695, %v94_v10  ;;  %v93_v25 = vand.u32 2147483647, %v729_v16 }
  0x12   :  { %v99_v20 = vsub.f32 0.0, %v91_v14  ;;  %v104_v22 = vmul.f32 1.442695, %v95_v12  ;;  %v106_v23 = vmul.f32 1.442695, %v96_v15  ;;  %v100_v26 = vsub.f32 0.0, %v92_v17 }
  0x13   :  { %v108_v24 = vmul.f32 1.442695, %v97_v18  ;;  %557 = vpow2.f32 %v102_v21  ;;  %v110_v27 = vmul.f32 1.442695, %v98_v19  ;;  %v101_v29 = vsub.f32 0.0, %v93_v25 }
  0x14   :  { %559 = vpow2.f32 %v104_v22  ;;  %v112_v28 = vmul.f32 1.442695, %v99_v20  ;;  %v114_v30 = vmul.f32 1.442695, %v100_v26 }
  0x15   :  { %561 = vpow2.f32 %v106_v23  ;;  %v116_v34 = vmul.f32 1.442695, %v101_v29 }
  0x16   :  { %563 = vpow2.f32 %v108_v24 }
  0x17   :  { %565 = vpow2.f32 %v110_v27 }
  0x18   :  { %567 = vpow2.f32 %v112_v28 }
  0x19   :  { %v733_v31 = vpop.eup %557  ;;  %569 = vpow2.f32 %v114_v30 }
  0x1a   :  { %v735_v32 = vpop.eup %559  ;;  %v740_v35 = vadd.f32 1.0, %v733_v31  ;;  %v121_v38 = vmul.f32 -0.5, %v733_v31  ;;  %v124_v44 = vand.u32 2147483647, %v733_v31 }
  0x1b   :  { %v737_v33 = vpop.eup %561  ;;  %v745_v37 = vadd.f32 1.0, %v735_v32  ;;  %v130_v39 = vmul.f32 -0.5, %v735_v32  ;;  %v133_v46 = vand.u32 2147483647, %v735_v32 }
  0x1c   :  { %v742_v36 = vpop.eup %563  ;;  %571 = vlog2.f32 %v740_v35  ;;  %v754_v41 = vadd.f32 1.0, %v737_v33  ;;  %v139_v42 = vmul.f32 -0.5, %v737_v33  ;;  %v122_v48 = vadd.f32 1.0, %v121_v38 }
  0x1d   :  { %v750_v40 = vpop.eup %565  ;;  %573 = vlog2.f32 %v745_v37  ;;  %v761_v45 = vadd.f32 1.0, %v742_v36  ;;  %v148_v47 = vmul.f32 -0.5, %v742_v36  ;;  %v131_v49 = vadd.f32 1.0, %v130_v39 }
  0x1e   :  { %v757_v43 = vpop.eup %567  ;;  %575 = vpow2.f32 %v116_v34  ;;  %v768_v50 = vadd.f32 1.0, %v750_v40  ;;  %v140_v52 = vadd.f32 1.0, %v139_v42  ;;  %v142_v53 = vand.u32 2147483647, %v737_v33 }
  0x1f   :  { %577 = vlog2.f32 %v754_v41  ;;  %v770_v51 = vpop.eup %569  ;;  %v157_v54 = vmul.f32 -0.5, %v750_v40  ;;  %v775_v55 = vadd.f32 1.0, %v757_v43  ;;  %vm777_vm0 = vcmp.lt.f32.partialorder %v124_v44, 0.0004427343 }
  0x20   :  { %579 = vlog2.f32 %v761_v45  ;;  %vm782_vm1 = vcmp.lt.f32.partialorder %v133_v46, 0.0004427343  ;;  %v149_v60 = vadd.f32 1.0, %v148_v47  ;;  %v151_v61 = vand.u32 2147483647, %v742_v36 }
  0x21   :  { %581 = vlog2.f32 %v768_v50  ;;  %v791_v63 = vmul.f32 %v733_v31, %v122_v48  ;;  %v794_v4 = vmul.f32 %v735_v32, %v131_v49  ;;  %v166_v7 = vmul.f32 -0.5, %v757_v43 }
  0x22   :  { %v572_v56 = vpop.eup %571  ;;  %583 = vlog2.f32 %v775_v55  ;;  %v798_v9 = vadd.f32 1.0, %v770_v51  ;;  %v801_v11 = vmul.f32 %v737_v33, %v140_v52  ;;  %vm803_vm2 = vcmp.lt.f32.partialorder %v142_v53, 0.0004427343 }
  0x23   :  { %v574_v58 = vpop.eup %573  ;;  %v158_v13 = vadd.f32 1.0, %v157_v54  ;;  %v160_v14 = vand.u32 2147483647, %v750_v40  ;;  %v808_v17 = vmul.f32 0.6931472, %v572_v56  ;;  %v815_v20 = vmul.f32 %v742_v36, %v149_v60 }
  0x24   :  { %v788_v62 = vpop.eup %575  ;;  %v810_v18 = vmul.f32 0.6931472, %v574_v58  ;;  %v169_v19 = vand.u32 2147483647, %v757_v43  ;;  %585 = vlog2.f32 %v798_v9  ;;  %vm817_vm3 = vcmp.lt.f32.partialorder %v151_v61, 0.0004427343 }
  0x25   :  { %v578_v10 = vpop.eup %577  ;;  %v175_v22 = vmul.f32 -0.5, %v770_v51  ;;  %v184_v23 = vmul.f32 -0.5, %v788_v62  ;;  %v167_v26 = vadd.f32 1.0, %v166_v7  ;;  %v178_v27 = vand.u32 2147483647, %v770_v51 }
  0x26   :  { %v580_v15 = vpop.eup %579  ;;  %v823_v25 = vmul.f32 0.6931472, %v578_v10  ;;  %v827_v28 = vadd.f32 1.0, %v788_v62  ;;  %v832_v34 = vmul.f32 %v750_v40, %v158_v13  ;;  %vm834_vm4 = vcmp.lt.f32.partialorder %v160_v14, 0.0004427343 }
  0x27   :  { %v582_v24 = vpop.eup %581  ;;  %v829_v30 = vmul.f32 0.6931472, %v580_v15  ;;  %v1294_v38 = vmov 0  ;;  %587 = vrcp.f32 %v740_v35  ;;  %vm847_vm5 = vcmp.lt.f32.partialorder %v169_v19, 0.0004427343 }
  0x28   :  { %v584_v29 = vpop.eup %583  ;;  %1293 = vst [vmem:[#allocation12_spill] sm:$0xff] %v832_v34  ;;  %v1295_v38 = vsel %vm834_vm4, 4294967295, %v1294_v38  ;;  %v1297_v44 = vmov 0  ;;  %589 = vlog2.f32 %v827_v28  ;;  %v852_v46 = vmul.f32 0.6931472, %v582_v24 }
  0x29   :  { %1296 = vst [vmem:[#allocation13_spill] sm:$0xff] %v1295_v38  ;;  %v1298_v44 = vsel %vm847_vm5, 4294967295, %v1297_v44  ;;  %v176_v47 = vadd.f32 1.0, %v175_v22  ;;  %v185_v48 = vadd.f32 1.0, %v184_v23  ;;  %591 = vrcp.f32 %v745_v37 }
  0x2a   :  { %1299 = vst [vmem:[#allocation14_spill] sm:$0xff] %v1298_v44  ;;  %v586_v49 = vpop.eup %585  ;;  %v859_v53 = vmul.f32 0.6931472, %v584_v29  ;;  %v862_v54 = vmul.f32 %v757_v43, %v167_v26  ;;  %vm864_vm6 = vcmp.lt.f32.partialorder %v178_v27, 0.0004427343  ;;  %v1303_v56 = vmov 0 }
  0x2b   :  { %1300 = vst [vmem:[#allocation15_spill] sm:$0xff] %v852_v46  ;;  %v1304_v56 = vsel %vm864_vm6, 4294967295, %v1303_v56  ;;  %v209_v61 = vand.u32 2147483648, %v740_v35  ;;  %593 = vrcp.f32 %v754_v41  ;;  %vm203_vm7 = vweird.f32 %v740_v35 }
  0x2c   :  { %1301 = vst [vmem:[#allocation16_spill] sm:$0xff] %v859_v53  ;;  %v207_v7 = vand.u32 2147483647, %v740_v35  ;;  %v224_v10 = vand.u32 2147483648, %v745_v37  ;;  %595 = vrcp.f32 %v761_v45  ;;  %v885_v15 = vmul.f32 0.6931472, %v586_v49 }
  0x2d   :  { %1302 = vst [vmem:[#allocation17_spill] sm:$0xff] %v862_v54  ;;  %v879_v13 = vpop.eup %587  ;;  %v888_v19 = vmul.f32 %v770_v51, %v176_v47  ;;  %v891_v22 = vmul.f32 %v788_v62, %v185_v48  ;;  %vm218_vm8 = vweird.f32 %v745_v37  ;;  %v222_v27 = vand.u32 2147483647, %v745_v37 }
  0x2e   :  { %1305 = vst [vmem:[#allocation18_spill] sm:$0xff] %v1304_v56  ;;  %v590_v23 = vpop.eup %589  ;;  %v199_v26 = vmul.f32 %v879_v13, %v740_v35  ;;  %v210_v47 = vor.u32 1.1754944e-38, %v209_v61  ;;  %v239_v48 = vand.u32 2147483648, %v754_v41  ;;  %597 = vrcp.f32 %v768_v50 }
  0x2f   :  { %1306 = vst [vmem:[#allocation19_spill] sm:$0xff] %v885_v15  ;;  %v901_v29 = vpop.eup %591  ;;  %vm906_vm10 = vcmp.eq.f32.partialorder %v207_v7, 8.507059e+37  ;;  %v912_v60 = vor.u32 1.1754944e-38, %v224_v10  ;;  %v237_v58 = vand.u32 2147483647, %v754_v41  ;;  %599 = vrcp.f32 %v775_v55 }
  0x30   :  { %1307 = vst [vmem:[#allocation20_spill] sm:$0xff] %v888_v19  ;;  %v200_v49 = vsub.f32 1.0, %v199_v26  ;;  %v214_v24 = vmul.f32 %v901_v29, %v745_v37  ;;  %v921_v42 = vmul.f32 0.6931472, %v590_v23  ;;  %v252_v7 = vand.u32 2147483647, %v761_v45 }
  0x31   :  { %1308 = vst [vmem:[#allocation21_spill] sm:$0xff] %v891_v22  ;;  %v915_v52 = vpop.eup %593  ;;  %vm204_vm11 = vweird.f32 %v879_v13  ;;  %v931_v53 = vor.u32 1.1754944e-38, %v239_v48  ;;  %v254_v61 = vand.u32 2147483648, %v761_v45  ;;  %vm219_vm13 = vweird.f32 %v901_v29 }
  0x32   :  { %1311 = vst [vmem:[#allocation22_spill] sm:$0xff] %v921_v42  ;;  %v925_v26 = vpop.eup %595  ;;  %v201_v10 = vmul.f32 %v879_v13, %v200_v49  ;;  %v215_v39 = vsub.f32 1.0, %v214_v24  ;;  %v229_v22 = vmul.f32 %v915_v52, %v754_v41  ;;  %vm944_vm14 = vmor %vm203_vm7, %vm204_vm11  ;;  %vm948_vm15 = vcmp.eq.f32.partialorder %v222_v27, 8.507059e+37 }
  0x33   :  { %v244_v23 = vmul.f32 %v925_v26, %v761_v45  ;;  %601 = vrcp.f32 %v798_v9  ;;  %vm957_vm9 = vcmp.eq.f32.partialorder %v237_v58, 8.507059e+37  ;;  %vm961_vm7 = vcmp.eq.f32.partialorder %v252_v7, 8.507059e+37  ;;  %vm978_vm6 = vmor %vm218_vm8, %vm219_vm13 }
  0x34   :  { %v202_v15 = vadd.f32 %v879_v13, %v201_v10  ;;  %v216_v19 = vmul.f32 %v901_v29, %v215_v39  ;;  %v230_v49 = vsub.f32 1.0, %v229_v22  ;;  %v940_v24 = vpop.eup %597  ;;  %v267_v10 = vand.u32 2147483647, %v768_v50 }
  0x35   :  { %v245_v42 = vsub.f32 1.0, %v244_v23  ;;  %v269_v39 = vand.u32 2147483648, %v768_v50  ;;  %v259_v23 = vmul.f32 %v940_v24, %v768_v50  ;;  %v600_v54 = vpop.eup %599  ;;  %v255_v58 = vor.u32 1.1754944e-38, %v254_v61  ;;  %v1126_v61 = vld [vmem:[#allocation6 + $0x28] sm:$0xff] }
  0x36   :  { %v231_v22 = vmul.f32 %v915_v52, %v230_v49  ;;  %v217_v44 = vadd.f32 %v901_v29, %v216_v19  ;;  %v206_v7 = vsel %vm944_vm14, %v879_v13, %v202_v15  ;;  %vm1322_vm11 = vweird.f32 %v915_v52 }
  0x37   :  { %v246_v49 = vmul.f32 %v925_v26, %v245_v42  ;;  %v260_v19 = vsub.f32 1.0, %v259_v23  ;;  %v274_v42 = vmul.f32 %v600_v54, %v775_v55  ;;  %vm1323_vm12 = vweird.f32 %v754_v41 }
  0x38   :  { %v232_v34 = vadd.f32 %v915_v52, %v231_v22  ;;  %vm988_vm5 = vmor %vm1323_vm12, %vm1322_vm11  ;;  %vm993_vm4 = vcmp.eq.f32.partialorder %v267_v10, 8.507059e+37  ;;  %v270_v13 = vor.u32 1.1754944e-38, %v269_v39  ;;  %vm279_vm13 = vweird.f32 %v600_v54 }
  0x39   :  { %v247_v15 = vadd.f32 %v925_v26, %v246_v49  ;;  %v261_v48 = vmul.f32 %v940_v24, %v260_v19  ;;  %v275_v22 = vsub.f32 1.0, %v274_v42  ;;  %v602_v41 = vpop.eup %601  ;;  %v211_v23 = vsel %vm906_vm10, %v210_v47, %v206_v7 }
  0x3a   :  { %v221_v10 = vsel %vm978_vm6, %v901_v29, %v217_v44  ;;  %vm1328_vm12 = vweird.f32 %v925_v26  ;;  %vm1329_vm11 = vweird.f32 %v761_v45  ;;  %v282_v49 = vand.u32 2147483647, %v775_v55 }
  0x3b   :  { %vm1009_vm14 = vmor %vm1329_vm11, %vm1328_vm12  ;;  %v284_v19 = vand.u32 2147483648, %v775_v55  ;;  %v236_v14 = vsel %vm988_vm5, %v915_v52, %v232_v34  ;;  %v262_v47 = vadd.f32 %v940_v24, %v261_v48  ;;  %vm1332_vm6 = vweird.f32 %v940_v24 }
  0x3c   :  { %vm1333_vm10 = vweird.f32 %v768_v50  ;;  %v276_v44 = vmul.f32 %v600_v54, %v275_v22  ;;  %v289_v46 = vmul.f32 %v602_v41, %v798_v9  ;;  %vm1336_vm12 = vweird.f32 %v775_v55 }
  0x3d   :  { %vm1023_vm8 = vmor %vm1333_vm10, %vm1332_vm6  ;;  %vm293_vm5 = vweird.f32 %v798_v9  ;;  %v297_v34 = vand.u32 2147483647, %v798_v9  ;;  %v299_v52 = vand.u32 2147483648, %v798_v9  ;;  %603 = vrcp.f32 %v827_v28 }
  0x3e   :  { %vm1030_vm11 = vmor %vm1336_vm12, %vm279_vm13  ;;  %v251_v50 = vsel %vm1009_vm14, %v925_v26, %v247_v15  ;;  %v277_v7 = vadd.f32 %v600_v54, %v276_v44  ;;  %v290_v42 = vsub.f32 1.0, %v289_v46  ;;  %vm294_vm6 = vweird.f32 %v602_v41 }
  0x3f   :  { %v266_v55 = vsel %vm1023_vm8, %v940_v24, %v262_v47  ;;  %vm1044_vm13 = vcmp.eq.f32.partialorder %v282_v49, 8.507059e+37  ;;  %v285_v48 = vor.u32 1.1754944e-38, %v284_v19  ;;  %v312_v22 = vand.u32 2147483647, %v827_v28  ;;  %vm1062_vm14 = vmor %vm293_vm5, %vm294_vm6 }
  0x40   :  { %v226_v38 = vsel %vm948_vm15, %v912_v60, %v221_v10  ;;  %v281_v26 = vsel %vm1030_vm11, %v600_v54, %v277_v7  ;;  %v291_v15 = vmul.f32 %v602_v41, %v290_v42  ;;  %v314_v39 = vand.u32 2147483648, %v827_v28  ;;  %v1122_v42 = vld [vmem:[#allocation6 + $0x18] sm:$0xff] }
  0x41   :  { %v241_v24 = vsel %vm957_vm9, %v931_v53, %v236_v14  ;;  %v256_v49 = vsel %vm961_vm7, %v255_v58, %v251_v50  ;;  %vm298_vm15 = vcmp.eq.f32.partialorder %v297_v34, 8.507059e+37  ;;  %v300_v56 = vor.u32 1.1754944e-38, %v299_v52  ;;  %v1115_v34 = vld [vmem:[#allocation6 + $0x8] sm:$0xff] }
  0x42   :  { %v271_v54 = vsel %vm993_vm4, %v270_v13, %v266_v55  ;;  %v292_v60 = vadd.f32 %v602_v41, %v291_v15  ;;  %vm308_vm8 = vweird.f32 %v827_v28  ;;  %vm318_vm10 = vcmp.ge.f32.partialorder %v709_v0, 0.0  ;;  %v1124_v55 = vld [vmem:[#allocation6 + $0x20] sm:$0xff] }
  0x43   :  { %v604_v53 = vpop.eup %603  ;;  %v286_v35 = vsel %vm1044_vm13, %v285_v48, %v281_v26  ;;  %vm1072_vm9 = vcmp.eq.f32.partialorder %v312_v22, 8.507059e+37  ;;  %vm319_vm7 = vcmp.ge.f32.partialorder %v711_v1, 0.0  ;;  %vm320_vm12 = vcmp.ge.f32.partialorder %v713_v2, 0.0 }
  0x44   :  { %v296_v27 = vsel %vm1062_vm14, %v602_v41, %v292_v60  ;;  %v304_v58 = vmul.f32 %v604_v53, %v827_v28  ;;  %v315_v37 = vor.u32 1.1754944e-38, %v314_v39  ;;  %v326_v13 = vmul.f32 %v733_v31, %v211_v23  ;;  %v1117_v28 = vld [vmem:[#allocation6 + $0x10] sm:$0xff] }
  0x45   :  { %v301_v10 = vsel %vm298_vm15, %v300_v56, %v296_v27  ;;  %vm321_vm4 = vcmp.ge.f32.partialorder %v715_v3, 0.0  ;;  %v327_v14 = vmul.f32 %v735_v32, %v226_v38  ;;  %v328_v47 = vmul.f32 %v737_v33, %v241_v24  ;;  %v1135_v39 = vld [vmem:[#allocation6 + $0x30] sm:$0xff]  ;;  %v1152_v27 = vld [vmem:[#allocation6 + $0x38] sm:$0xff] }
  0x46   :  { %v305_v45 = vsub.f32 1.0, %v304_v58  ;;  %vm309_vm11 = vweird.f32 %v604_v53  ;;  %vm322_vm5 = vcmp.ge.f32.partialorder %v718_v5, 0.0  ;;  %vm323_vm6 = vcmp.ge.f32.partialorder %v720_v6, 0.0 }
  0x47   :  { %vm324_vm13 = vcmp.ge.f32.partialorder %v723_v8, 0.0  ;;  %vm325_vm14 = vcmp.ge.f32.partialorder %v729_v16, 0.0  ;;  %v329_v41 = vmul.f32 %v742_v36, %v256_v49  ;;  %v330_v31 = vmul.f32 %v750_v40, %v271_v54  ;;  %vm1099_vm15 = vmor %vm308_vm8, %vm309_vm11 }
  0x48   :  { %v306_v44 = vmul.f32 %v604_v53, %v305_v45  ;;  %v331_v46 = vmul.f32 %v757_v43, %v286_v35  ;;  %v332_v32 = vmul.f32 %v770_v51, %v301_v10  ;;  %v1095_v33 = vsel %vm318_vm10, %v211_v23, %v326_v13  ;;  %v1113_v23 = vld [vmem:[#allocation6] sm:$0xff] }
  0x49   :  { %v1105_v36 = vsel %vm319_vm7, %v226_v38, %v327_v14  ;;  %v1109_v40 = vsel %vm320_vm12, %v241_v24, %v328_v47  ;;  %v342_v43 = vmax.f32 %v709_v0, 0.0  ;;  %v343_v51 = vmax.f32 %v711_v1, 0.0 }
  0x4a   :  { %v307_v52 = vadd.f32 %v604_v53, %v306_v44  ;;  %v344_v50 = vmax.f32 %v713_v2, 0.0  ;;  %v345_v38 = vmax.f32 %v715_v3, 0.0  ;;  %v346_v7 = vmax.f32 %v718_v5, 0.0 }
  0x4b   :  { %v347_v48 = vmax.f32 %v720_v6, 0.0  ;;  %v350_v22 = vmul.f32 %v1113_v23, %v709_v0  ;;  %v351_v26 = vmul.f32 %v1115_v34, %v711_v1  ;;  %v352_v15 = vmul.f32 %v1117_v28, %v713_v2 }
  0x4c   :  { %v311_v24 = vsel %vm1099_vm15, %v604_v53, %v307_v52  ;;  %v353_v19 = vmul.f32 %v1122_v42, %v715_v3  ;;  %v354_v56 = vmul.f32 %v1124_v55, %v718_v5  ;;  %v355_v0 = vmul.f32 %v1126_v61, %v720_v6 }
  0x4d   :  { %v316_v1 = vsel %vm1072_vm9, %v315_v37, %v311_v24  ;;  %v337_v2 = vsel %vm321_vm4, %v256_v49, %v329_v41  ;;  %v348_v60 = vmax.f32 %v723_v8, 0.0  ;;  %v356_v53 = vmul.f32 %v1135_v39, %v723_v8 }
  0x4e   :  { %v333_v58 = vmul.f32 %v788_v62, %v316_v1  ;;  %v338_v13 = vsel %vm322_vm5, %v271_v54, %v330_v31  ;;  %v339_v14 = vsel %vm323_vm6, %v286_v35, %v331_v46  ;;  %v340_v9 = vsel %vm324_vm13, %v301_v10, %v332_v32 }
  0x4f   :  { %v1164_v49 = vmul.f32 %v1152_v27, %v729_v16  ;;  %v358_v37 = vsub.f32 %v342_v43, %v350_v22  ;;  %v359_v47 = vsub.f32 %v343_v51, %v351_v26  ;;  %v360_v45 = vsub.f32 %v344_v50, %v352_v15 }
  0x50   :  { %v361_v41 = vsub.f32 %v345_v38, %v353_v19  ;;  %v1166_v44 = vsub.f32 %v346_v7, %v354_v56  ;;  %v1168_v5 = vsub.f32 %v347_v48, %v355_v0  ;;  %v341_v6 = vsel %vm325_vm14, %v316_v1, %v333_v58 }
  0x51   :  { %v1172_v54 = vsub.f32 %v348_v60, %v356_v53  ;;  %v374_v8 = vmul.f32 %v1095_v33, %v1113_v23  ;;  %v375_v35 = vmul.f32 %v1105_v36, %v1115_v34  ;;  %v376_v10 = vmul.f32 %v1109_v40, %v1117_v28 }
  0x52   :  { %v377_v31 = vmul.f32 %v337_v2, %v1122_v42  ;;  %v378_v46 = vmul.f32 %v338_v13, %v1124_v55  ;;  %v379_v32 = vmul.f32 %v339_v14, %v1126_v61  ;;  %v380_v29 = vmul.f32 %v340_v9, %v1135_v39 }
  0x53   :  { %v381_v43 = vmul.f32 %v341_v6, %v1152_v27  ;;  %v382_v51 = vsub.f32 1.0, %v1095_v33  ;;  %v383_v52 = vsub.f32 1.0, %v1105_v36  ;;  %v384_v50 = vsub.f32 1.0, %v1109_v40 }
  0x54   :  { %v385_v38 = vsub.f32 1.0, %v337_v2  ;;  %v386_v7 = vsub.f32 1.0, %v338_v13  ;;  %v387_v48 = vsub.f32 1.0, %v339_v14  ;;  %v388_v22 = vsub.f32 1.0, %v340_v9 }
  0x55   :  { %v389_v26 = vsub.f32 1.0, %v341_v6  ;;  %v390_v15 = vsub.f32 1.0, %v1113_v23  ;;  %v391_v24 = vsub.f32 1.0, %v1115_v34  ;;  %v392_v19 = vsub.f32 1.0, %v1117_v28 }
  0x56   :  { %v393_v56 = vsub.f32 1.0, %v1122_v42  ;;  %v394_v0 = vsub.f32 1.0, %v1124_v55  ;;  %v395_v33 = vsub.f32 1.0, %v1126_v61  ;;  %v396_v36 = vsub.f32 1.0, %v1135_v39 }
  0x57   :  { %v397_v40 = vsub.f32 1.0, %v1152_v27  ;;  %v398_v1 = vmul.f32 %v390_v15, %v382_v51  ;;  %v399_v2 = vmul.f32 %v391_v24, %v383_v52  ;;  %v400_v60 = vmul.f32 %v392_v19, %v384_v50 }
  0x58   :  { %v401_v53 = vmul.f32 %v393_v56, %v385_v38  ;;  %v402_v58 = vmul.f32 %v394_v0, %v386_v7  ;;  %v403_v13 = vmul.f32 %v395_v33, %v387_v48  ;;  %v1347_v14 = vsel %vm777_vm0, %v791_v63, %v808_v17 }
  0x59   :  { %v1201_v9 = vadd.f32 %v358_v37, %v1347_v14  ;;  %v1348_v6 = vsel %vm782_vm1, %v794_v4, %v810_v18  ;;  %v404_v51 = vmul.f32 %v396_v36, %v388_v22  ;;  %v405_v52 = vmul.f32 %v397_v40, %v389_v26 }
  0x5a   :  { %v1208_v3 = vadd.f32 %v359_v47, %v1348_v6  ;;  %v1349_v50 = vsel %vm803_vm2, %v801_v11, %v823_v25  ;;  %v1350_v63 = vsel %vm817_vm3, %v815_v20, %v829_v30  ;;  %v406_v17 = vadd.f32 %v398_v1, %v374_v8 }
  0x5b   :  { %v1215_v57 = vadd.f32 %v360_v45, %v1349_v50  ;;  %v1222_v59 = vadd.f32 %v361_v41, %v1350_v63  ;;  %v407_v4 = vadd.f32 %v399_v2, %v375_v35  ;;  %v408_v18 = vadd.f32 %v400_v60, %v376_v10 }
  0x5c   :  { %v409_v37 = vadd.f32 %v401_v53, %v377_v31  ;;  %v410_v47 = vadd.f32 %v402_v58, %v378_v46  ;;  %v411_v38 = vadd.f32 %v403_v13, %v379_v32  ;;  %v412_v7 = vadd.f32 %v404_v51, %v380_v29 }
  0x5d   :  { %v413_v12 = vadd.f32 %v405_v52, %v381_v43  ;;  %v414_v48 = vmul.f32 0.25, %v1113_v23  ;;  %v415_v11 = vmul.f32 0.25, %v1115_v34  ;;  %v416_v25 = vmul.f32 0.25, %v1117_v28 }
  0x5e   :  { %v417_v21 = vmul.f32 0.25, %v1122_v42  ;;  %v422_v45 = vmul.f32 0.75, %v390_v15  ;;  %v423_v20 = vmul.f32 0.75, %v391_v24  ;;  %v418_v30 = vmul.f32 0.25, %v1124_v55 }
  0x5f   :  { %v419_v41 = vmul.f32 0.25, %v1126_v61  ;;  %v424_v8 = vmul.f32 0.75, %v392_v19  ;;  %v425_v35 = vmul.f32 0.75, %v393_v56  ;;  %v420_v10 = vmul.f32 0.25, %v1135_v39 }
  0x60   :  { %v421_v31 = vmul.f32 0.25, %v1152_v27  ;;  %v426_v46 = vmul.f32 0.75, %v394_v0  ;;  %v427_v23 = vmul.f32 0.75, %v395_v33  ;;  %v428_v32 = vmul.f32 0.75, %v396_v36 }
  0x61   :  { %v429_v34 = vmul.f32 0.75, %v397_v40  ;;  %v430_v29 = vadd.f32 %v422_v45, %v414_v48  ;;  %v431_v28 = vadd.f32 %v423_v20, %v415_v11  ;;  %v1351_v42 = vand.u32 2147483647, %v788_v62 }
  0x62   :  { %v432_v55 = vadd.f32 %v424_v8, %v416_v25  ;;  %v433_v61 = vadd.f32 %v425_v35, %v417_v21  ;;  %v438_v22 = vsub.f32 1.0, %v406_v17  ;;  %v439_v26 = vsub.f32 1.0, %v407_v4  ;;  %v1354_v4 = vld [vmem:[#allocation13_spill] sm:$0xff]  ;;  %v1363_v35 = vld [vmem:[#allocation16_spill] sm:$0xff] }
  0x63   :  { %vm1234_vm0 = vcmp.lt.f32.partialorder %v1351_v42, 0.0004427343  ;;  %v440_v15 = vsub.f32 1.0, %v408_v18  ;;  %v441_v39 = vsub.f32 1.0, %v409_v37  ;;  %v442_v24 = vsub.f32 1.0, %v410_v47  ;;  %v1356_v18 = vld [vmem:[#allocation12_spill] sm:$0xff] }
  0x64   :  { %v443_v27 = vsub.f32 1.0, %v411_v38  ;;  %v444_v19 = vsub.f32 1.0, %v412_v7  ;;  %v445_v56 = vsub.f32 1.0, %v413_v12  ;;  %v446_v0 = vmax.f32 %v438_v22, 0.0  ;;  %v1357_v37 = vld [vmem:[#allocation15_spill] sm:$0xff]  ;;  %v1362_v8 = vld [vmem:[#allocation17_spill] sm:$0xff] }
  0x65   :  { %v447_v33 = vmax.f32 %v439_v26, 0.0  ;;  %v448_v36 = vmax.f32 %v440_v15, 0.0  ;;  %v449_v40 = vmax.f32 %v441_v39, 0.0  ;;  %v450_v1 = vmax.f32 %v442_v24, 0.0  ;;  %v1366_v42 = vld [vmem:[#allocation21_spill] sm:$0xff] }
  0x66   :  { %v451_v62 = vmax.f32 %v443_v27, 0.0  ;;  %v434_v2 = vadd.f32 %v426_v46, %v418_v30  ;;  %v452_v60 = vmax.f32 %v444_v19, 0.0  ;;  %v454_v53 = vmul.f32 %v446_v0, %v446_v0 }
  0x67   :  { %v455_v58 = vmul.f32 %v447_v33, %v447_v33  ;;  %v435_v13 = vadd.f32 %v427_v23, %v419_v41  ;;  %v456_v14 = vmul.f32 %v448_v36, %v448_v36  ;;  %v457_v6 = vmul.f32 %v449_v40, %v449_v40  ;;  %v1360_v41 = vld [vmem:[#allocation14_spill] sm:$0xff] }
  0x68   :  { %v458_v51 = vmul.f32 %v450_v1, %v450_v1  ;;  %v453_v52 = vmax.f32 %v445_v56, 0.0  ;;  %v459_v50 = vmul.f32 %v451_v62, %v451_v62  ;;  %v470_v63 = vmul.f32 %v454_v53, %v430_v29 }
  0x69   :  { %v471_v17 = vmul.f32 %v455_v58, %v431_v28  ;;  %vm1355_vm1 = vnez %v1354_v4  ;;  %v436_v7 = vadd.f32 %v428_v32, %v420_v10  ;;  %v472_v12 = vmul.f32 %v456_v14, %v432_v55  ;;  %v1369_v55 = vld [vmem:[#allocation20_spill] sm:$0xff] }
  0x6a   :  { %v1358_v47 = vsel %vm1355_vm1, %v1356_v18, %v1357_v37  ;;  %v473_v48 = vmul.f32 %v457_v6, %v433_v61  ;;  %v460_v11 = vmul.f32 %v452_v60, %v452_v60  ;;  %v474_v25 = vmul.f32 %v458_v51, %v434_v2  ;;  %v1370_v61 = vld [vmem:[#allocation19_spill] sm:$0xff] }
  0x6b   :  { %v370_v38 = vadd.f32 %v1166_v44, %v1358_v47  ;;  %v478_v21 = vmul.f32 %v470_v63, %v1201_v9  ;;  %v479_v45 = vmul.f32 %v471_v17, %v1208_v3  ;;  %v1359_v20 = vmax.f32 %v729_v16, 0.0  ;;  %v1365_v3 = vld [vmem:[#allocation22_spill] sm:$0xff] }
  0x6c   :  { %vm1361_vm2 = vnez %v1360_v41  ;;  %v437_v10 = vadd.f32 %v429_v34, %v421_v31  ;;  %v480_v23 = vmul.f32 %v472_v12, %v1215_v57  ;;  %v461_v32 = vmul.f32 %v453_v52, %v453_v52 }
  0x6d   :  { %v365_v30 = vsub.f32 %v1359_v20, %v1164_v49  ;;  %v1364_v46 = vsel %vm1361_vm2, %v1362_v8, %v1363_v35  ;;  %v475_v29 = vmul.f32 %v459_v50, %v435_v13  ;;  %v481_v9 = vmul.f32 %v473_v48, %v1222_v59  ;;  %v1367_v49 = vld [vmem:[#allocation18_spill] sm:$0xff] }
  0x6e   :  { %v371_v44 = vadd.f32 %v1168_v5, %v1364_v46  ;;  %v513_v28 = vadd.f32 %v479_v45, %v478_v21  ;;  %v189_v16 = vsel %vm1234_vm0, %v1366_v42, %v1365_v3  ;;  %vm1368_vm3 = vnez %v1367_v49 }
  0x6f   :  { %v1371_v22 = vsel %vm1368_vm3, %v1369_v55, %v1370_v61  ;;  %v476_v31 = vmul.f32 %v460_v11, %v436_v7  ;;  %v482_v34 = vmul.f32 %v474_v25, %v370_v38  ;;  %v373_v26 = vadd.f32 %v365_v30, %v189_v16 }
  0x70   :  { %v372_v5 = vadd.f32 %v1172_v54, %v1371_v22  ;;  %v514_v57 = vadd.f32 %v513_v28, %v480_v23  ;;  %v477_v15 = vmul.f32 %v461_v32, %v437_v10  ;;  %v483_v39 = vmul.f32 %v475_v29, %v371_v44 }
  0x71   :  { %vm530_vm8 = vcmask 0  }
  0x72   :  { %v515_v59 = vadd.f32 %v514_v57, %v481_v9  ;;  %v484_v24 = vmul.f32 %v476_v31, %v372_v5  ;;  %v485_v19 = vmul.f32 %v477_v15, %v373_v26 }
  0x74   :  { %v516_v27 = vadd.f32 %v515_v59, %v482_v34 }
  0x76   :  { %v517_v56 = vadd.f32 %v516_v27, %v483_v39 }
  0x78   :  { %v518_v43 = vadd.f32 %v517_v56, %v484_v24 }
  0x7a   :  { %v519_v0 = vadd.f32 %v518_v43, %v485_v19 }
  0x7c   :  { %520 = vadd.xlane.f32.xlu0 %v519_v0 }
  0xef   :  { %v521_v33 = vpop.xlane.xlu0 %520 }
  0xf0   :  { %v522_v36 = vrot.slane %v521_v33, 4 }
  0xf2   :  { %v523_v40 = vadd.f32 %v522_v36, %v521_v33 }
  0xf4   :  { %v524_v1 = vrot.slane %v523_v40, 2 }
  0xf6   :  { %v525_v62 = vadd.f32 %v524_v1, %v523_v40 }
  0xf8   :  { %v526_v54 = vrot.slane %v525_v62, 1 }
  0xfa   :  { %v527_v2 = vadd.f32 %v526_v54, %v525_v62 }
  0xfc   :  { %550 = vpush %v527_v2 }
 0x12d   :  { %s551_s24 = spop %550 }
 0x12e   :  { %v529_v60 = vstv %s551_s24 }
 0x12f   :  { %531 = vst.msk [vmem:[#allocation8] sm:$0x1] %vm530_vm8, %v529_v60 }
 0x130   :  { %542 = dma.vmem_to_hbm [thread:$0]  %s538_s1, 16, %s540_s23, [#allocation5]  }
 0x131   :  { %681 = dma.done.wait [#allocation5], 16  }
 0x132   :  { %682 = vsyncadd [#allocation5], 4294967280 }
 0x133   :  { %547 = vsyncpa [#allocation4], 1 }
 0x134   :  { %548 = vsyncpa [#allocation7], 1 }
 0x135   :  { %549 = vsyncpa [#allocation5], 1 }

</bundles_post_ra>
